<compile_context>
chip_gen: v5e
topology: v5e:2x2
jax: 0.10.0
libtpu: 0.0.40
codegen_flags: <defaults>
</compile_context>

<pallas_src>
import functools
import math

import jax
import jax.numpy as jnp
from jax import lax
from jax.experimental import pallas as pl
from jax.experimental.pallas import tpu as pltpu


_SQRT_2_OVER_PI = math.sqrt(2.0 / math.pi)
_GELU_COEFF = 0.044715
_LN_EPS = 1e-5
_NEG_BIG = -1e30  # finite "−inf" for the causal mask (avoids inf−inf NaNs)


# ----------------------------------------------------------------------------
# In-kernel helpers (f32 math on values already resident in VMEM / vregs)
# ----------------------------------------------------------------------------
def _layernorm(x, scale, shift):
    mean = jnp.mean(x, axis=-1, keepdims=True)
    var = jnp.mean(jnp.square(x - mean), axis=-1, keepdims=True)  # unbiased=False
    norm = (x - mean) * lax.rsqrt(var + _LN_EPS)                  # EUP rsqrt
    return scale * norm + shift


def _gelu(x):
    # 0.5 * x * (1 + tanh(sqrt(2/pi) * (x + 0.044715 * x^3)))
    return 0.5 * x * (1.0 + jnp.tanh(_SQRT_2_OVER_PI * (x + _GELU_COEFF * x * x * x)))


# ----------------------------------------------------------------------------
# Single fused kernel:  out = FF_block( Attn_block(x) )
# ----------------------------------------------------------------------------
def _transformer_block_kernel(x_ref, ln1s_ref, ln1b_ref, wqkv_ref, wo_ref, bo_ref,
                              ln2s_ref, ln2b_ref, w1_ref, b1_ref, w2_ref, b2_ref,
                              o_ref, *, num_heads, batch, seq_len):
    x = x_ref[...].astype(jnp.float32)                    # (N, D), N = B*T
    n_rows, d_model = x.shape
    hd = d_model // num_heads
    inv_scale = 1.0 / math.sqrt(hd)

    # ---------------- LN1 + fused QKV ----------------
    xn = _layernorm(x, ln1s_ref[...], ln1b_ref[...])
    qkv = jnp.dot(xn, wqkv_ref[...], preferred_element_type=jnp.float32)  # (N, 3D)

    # Layout-preserving row split (seq_len == sublane group): (N, 3D) -> (B, T, 3D)
    qkv3 = qkv.reshape(batch, seq_len, 3 * d_model)
    q = qkv3[:, :, 0:d_model]
    k = qkv3[:, :, d_model:2 * d_model]
    v = qkv3[:, :, 2 * d_model:3 * d_model]

    # Additive causal bias (finite negative, folds into the VPU add)
    row = lax.broadcasted_iota(jnp.int32, (seq_len, seq_len), 0)
    col = lax.broadcasted_iota(jnp.int32, (seq_len, seq_len), 1)
    neg_bias = jnp.where(col > row, jnp.float32(_NEG_BIG), jnp.float32(0.0))

    # ---------------- causal multi-head attention ----------------
    # Batched-over-batch 3-D einsums per head; heads unrolled (tiny, static).
    ctx_heads = []
    for h in range(num_heads):
        sl = slice(h * hd, (h + 1) * hd)
        qh, kh, vh = q[..., sl], k[..., sl], v[..., sl]            # (B, T, hd)
        s = jnp.einsum("bqd,bkd->bqk", qh, kh,
                       preferred_element_type=jnp.float32) * inv_scale
        s = s + neg_bias
        s = s - jnp.max(s, axis=-1, keepdims=True)
        p = jnp.exp(s)
        p = p * pl.reciprocal(jnp.sum(p, axis=-1, keepdims=True), approx=True)
        ctx_heads.append(jnp.einsum("bqk,bkd->bqd", p, vh,
                                    preferred_element_type=jnp.float32))
    ctx = jnp.concatenate(ctx_heads, axis=-1).reshape(n_rows, d_model)  # (N, D)

    # Single out-projection matmul + bias, residual add
    attn = jnp.dot(ctx, wo_ref[...], preferred_element_type=jnp.float32) + bo_ref[...]
    x = x + attn                                           # dropout = identity (eval)

    # ---------------- LN2 + feed-forward ----------------
    xn2 = _layernorm(x, ln2s_ref[...], ln2b_ref[...])
    h1 = jnp.dot(xn2, w1_ref[...], preferred_element_type=jnp.float32) + b1_ref[...]
    h1 = _gelu(h1)
    y = jnp.dot(h1, w2_ref[...], preferred_element_type=jnp.float32) + b2_ref[...]

    o_ref[...] = (x + y).astype(o_ref.dtype)               # residual add


# ----------------------------------------------------------------------------
# Wrapper
# ----------------------------------------------------------------------------
def transformer_block_pallas(x, params, *, num_heads):
    """Full TransformerBlock forward (dropout = identity / eval mode)."""
    B, T, D = x.shape
    H = params["w1"].shape[1]                               # 4 * D
    N = B * T
    itemsize = x.dtype.itemsize

    # Fold (B, T) into one row axis; fuse Q/K/V weights into one (D, 3D) matrix.
    x2 = x.reshape(N, D)
    wqkv = jnp.concatenate([params["wq"], params["wk"], params["wv"]], axis=1)

    flops = (2 * N * D * 3 * D          # QKV
             + 4 * N * T * D            # scores + context (all heads/batches)
             + 2 * N * D * D            # out projection
             + 4 * N * D * H)           # feed-forward
    transcendentals = (B * num_heads * T * T   # softmax exp
                       + N * H                 # GELU tanh
                       + 2 * N)                # LN rsqrt
    bytes_accessed = (2 * N * D * itemsize                               # x in/out
                      + (3 * D * D + D * D + D * H + H * D) * itemsize   # weights
                      + (6 * D + H) * itemsize)                          # vecs/biases
    cost = pl.CostEstimate(flops=int(flops),
                           transcendentals=int(transcendentals),
                           bytes_accessed=int(bytes_accessed))

    kernel = functools.partial(_transformer_block_kernel,
                               num_heads=num_heads, batch=B, seq_len=T)

    def const(shape):
        return pl.BlockSpec(shape, lambda i: tuple(0 for _ in shape))

    out = pl.pallas_call(
        kernel,
        out_shape=jax.ShapeDtypeStruct((N, D), x.dtype),
        grid_spec=pltpu.PrefetchScalarGridSpec(
            num_scalar_prefetch=0,
            grid=(1,),                                      # one step: all-resident
            in_specs=[
                const((N, D)),                              # x
                const((1, D)), const((1, D)),               # ln1 scale / shift
                const((D, 3 * D)),                          # wqkv (fused)
                const((D, D)),                              # wo
                const((1, D)),                              # bo
                const((1, D)), const((1, D)),               # ln2 scale / shift
                const((D, H)),                              # w1
                const((1, H)),                              # b1
                const((H, D)),                              # w2
                const((1, D)),                              # b2
            ],
            out_specs=const((N, D)),
        ),
        compiler_params=pltpu.CompilerParams(dimension_semantics=("arbitrary",)),
        cost_estimate=cost,
    )(x2,
      params["ln1_scale"].reshape(1, D), params["ln1_shift"].reshape(1, D),
      wqkv, params["wo"], params["bo"].reshape(1, D),
      params["ln2_scale"].reshape(1, D), params["ln2_shift"].reshape(1, D),
      params["w1"], params["b1"].reshape(1, H),
      params["w2"], params["b2"].reshape(1, D))

    return out.reshape(B, T, D)


# ----------------------------------------------------------------------------
# Pure-JAX reference (mirrors the PyTorch module, eval mode)
# ----------------------------------------------------------------------------
def transformer_block_reference(x, params, *, num_heads):
    B, T, D = x.shape
    hd = D // num_heads

    def ln(v, s, b):
        m = v.mean(-1, keepdims=True)
        var = ((v - m) ** 2).mean(-1, keepdims=True)
        return s * (v - m) / jnp.sqrt(var + _LN_EPS) + b

    shortcut = x
    h = ln(x, params["ln1_scale"], params["ln1_shift"])
    q = h @ params["wq"]
    k = h @ params["wk"]
    v = h @ params["wv"]

    def split(a):
        return a.reshape(B, T, num_heads, hd).transpose(0, 2, 1, 3)

    qh, kh, vh = split(q), split(k), split(v)
    s = jnp.einsum("bhqd,bhkd->bhqk", qh, kh)
    mask = jnp.triu(jnp.ones((T, T), dtype=bool), k=1)
    s = jnp.where(mask, -jnp.inf, s)
    w = jax.nn.softmax(s / math.sqrt(hd), axis=-1)
    ctx = jnp.einsum("bhqk,bhkd->bhqd", w, vh).transpose(0, 2, 1, 3).reshape(B, T, D)
    attn = ctx @ params["wo"] + params["bo"]
    x = shortcut + attn

    shortcut = x
    h = ln(x, params["ln2_scale"], params["ln2_shift"])
    h = h @ params["w1"] + params["b1"]
    h = 0.5 * h * (1.0 + jnp.tanh(_SQRT_2_OVER_PI * (h + _GELU_COEFF * h ** 3)))
    h = h @ params["w2"] + params["b2"]
    return shortcut + h


# ----------------------------------------------------------------------------
# Demo / self-check
# ----------------------------------------------------------------------------
if __name__ == "__main__":
    # cfg: emb_dim=32, context_length=8, n_heads=4, drop_rate=0.0, qkv_bias=False
    B, T, D = 2, 8, 32
    num_heads = 4
    H = 4 * D

    key = jax.random.PRNGKey(0)
    ks = jax.random.split(key, 8)
    scale = 0.05

    x = jax.random.normal(ks[0], (B, T, D), dtype=jnp.float32)
    params = {
        # LayerNorm params at module-init values (ones / zeros)
        "ln1_scale": jnp.ones((D,), jnp.float32),
        "ln1_shift": jnp.zeros((D,), jnp.float32),
        "ln2_scale": jnp.ones((D,), jnp.float32),
        "ln2_shift": jnp.zeros((D,), jnp.float32),
        # Attention weights in (in, out) layout; qkv_bias=False
        "wq": jax.random.normal(ks[1], (D, D), jnp.float32) * scale,
        "wk": jax.random.normal(ks[2], (D, D), jnp.float32) * scale,
        "wv": jax.random.normal(ks[3], (D, D), jnp.float32) * scale,
        "wo": jax.random.normal(ks[4], (D, D), jnp.float32) * scale,
        "bo": jnp.zeros((D,), jnp.float32),
        # FeedForward weights
        "w1": jax.random.normal(ks[5], (D, H), jnp.float32) * scale,
        "b1": jax.random.normal(ks[6], (H,), jnp.float32) * scale,
        "w2": jax.random.normal(ks[7], (H, D), jnp.float32) * scale,
        "b2": jnp.zeros((D,), jnp.float32),
    }

    out = transformer_block_pallas(x, params, num_heads=num_heads)
    out = jax.block_until_ready(out)

    ref = transformer_block_reference(x, params, num_heads=num_heads)

    assert out.shape == x.shape and out.dtype == x.dtype
    # Tolerance slightly loosened vs f64: softmax uses the EUP approx reciprocal.
    assert jnp.allclose(out, ref, atol=2e-3, rtol=2e-3), (
        "mismatch vs reference: max abs err = "
        f"{float(jnp.max(jnp.abs(out - ref)))}"
    )

    print("KERNEL_OK")
</pallas_src>

<mosaic_0001>
module attributes {stable_mosaic.version = 11 : i64} {
  func.func @_transformer_block_kernel(%arg0: i32, %arg1: memref<16x32xf32, #tpu.memory_space<vmem>>, %arg2: memref<1x32xf32, #tpu.memory_space<vmem>>, %arg3: memref<1x32xf32, #tpu.memory_space<vmem>>, %arg4: memref<32x96xf32, #tpu.memory_space<vmem>>, %arg5: memref<32x32xf32, #tpu.memory_space<vmem>>, %arg6: memref<1x32xf32, #tpu.memory_space<vmem>>, %arg7: memref<1x32xf32, #tpu.memory_space<vmem>>, %arg8: memref<1x32xf32, #tpu.memory_space<vmem>>, %arg9: memref<32x128xf32, #tpu.memory_space<vmem>>, %arg10: memref<1x128xf32, #tpu.memory_space<vmem>>, %arg11: memref<128x32xf32, #tpu.memory_space<vmem>>, %arg12: memref<1x32xf32, #tpu.memory_space<vmem>>, %arg13: memref<16x32xf32, #tpu.memory_space<vmem>>) attributes {dimension_semantics = [#tpu.dimension_semantics<arbitrary>], iteration_bounds = array<i64: 1>, scalar_prefetch = 0 : i64, scratch_operands = 0 : i64, tpu.core_type = #tpu.core_type<tc>, window_params = [{pipeline_mode = #tpu.pipeline_mode<synchronous>, transform_indices = @transform_0, window_bounds = array<i64: 16, 32>}, {pipeline_mode = #tpu.pipeline_mode<synchronous>, transform_indices = @transform_1, window_bounds = array<i64: 1, 32>}, {pipeline_mode = #tpu.pipeline_mode<synchronous>, transform_indices = @transform_2, window_bounds = array<i64: 1, 32>}, {pipeline_mode = #tpu.pipeline_mode<synchronous>, transform_indices = @transform_3, window_bounds = array<i64: 32, 96>}, {pipeline_mode = #tpu.pipeline_mode<synchronous>, transform_indices = @transform_4, window_bounds = array<i64: 32, 32>}, {pipeline_mode = #tpu.pipeline_mode<synchronous>, transform_indices = @transform_5, window_bounds = array<i64: 1, 32>}, {pipeline_mode = #tpu.pipeline_mode<synchronous>, transform_indices = @transform_6, window_bounds = array<i64: 1, 32>}, {pipeline_mode = #tpu.pipeline_mode<synchronous>, transform_indices = @transform_7, window_bounds = array<i64: 1, 32>}, {pipeline_mode = #tpu.pipeline_mode<synchronous>, transform_indices = @transform_8, window_bounds = array<i64: 32, 128>}, {pipeline_mode = #tpu.pipeline_mode<synchronous>, transform_indices = @transform_9, window_bounds = array<i64: 1, 128>}, {pipeline_mode = #tpu.pipeline_mode<synchronous>, transform_indices = @transform_10, window_bounds = array<i64: 128, 32>}, {pipeline_mode = #tpu.pipeline_mode<synchronous>, transform_indices = @transform_11, window_bounds = array<i64: 1, 32>}, {pipeline_mode = #tpu.pipeline_mode<synchronous>, transform_indices = @transform_12, window_bounds = array<i64: 16, 32>}]} {
    %c0 = arith.constant 0 : index
    %c0_0 = arith.constant 0 : index
    %0 = vector.load %arg1[%c0, %c0_0] : memref<16x32xf32, #tpu.memory_space<vmem>>, vector<16x32xf32>
    %c0_1 = arith.constant 0 : index
    %c0_2 = arith.constant 0 : index
    %1 = vector.load %arg2[%c0_1, %c0_2] : memref<1x32xf32, #tpu.memory_space<vmem>>, vector<1x32xf32>
    %c0_3 = arith.constant 0 : index
    %c0_4 = arith.constant 0 : index
    %2 = vector.load %arg3[%c0_3, %c0_4] : memref<1x32xf32, #tpu.memory_space<vmem>>, vector<1x32xf32>
    %cst = arith.constant dense<0.000000e+00> : vector<16xf32>
    %3 = vector.multi_reduction <add>, %0, %cst [1] : vector<16x32xf32> to vector<16xf32>
    %4 = vector.shape_cast %3 : vector<16xf32> to vector<16x1xf32>
    %cst_5 = arith.constant 3.200000e+01 : f32
    %5 = vector.broadcast %cst_5 : f32 to vector<16x1xf32>
    %6 = arith.divf %4, %5 : vector<16x1xf32>
    %7 = vector.broadcast %6 : vector<16x1xf32> to vector<16x32xf32>
    %8 = arith.subf %0, %7 : vector<16x32xf32>
    %9 = arith.mulf %8, %8 : vector<16x32xf32>
    %cst_6 = arith.constant dense<0.000000e+00> : vector<16xf32>
    %10 = vector.multi_reduction <add>, %9, %cst_6 [1] : vector<16x32xf32> to vector<16xf32>
    %11 = vector.shape_cast %10 : vector<16xf32> to vector<16x1xf32>
    %cst_7 = arith.constant 3.200000e+01 : f32
    %12 = vector.broadcast %cst_7 : f32 to vector<16x1xf32>
    %13 = arith.divf %11, %12 : vector<16x1xf32>
    %14 = vector.broadcast %6 : vector<16x1xf32> to vector<16x32xf32>
    %15 = arith.subf %0, %14 : vector<16x32xf32>
    %cst_8 = arith.constant 9.99999974E-6 : f32
    %16 = vector.broadcast %cst_8 : f32 to vector<16x1xf32>
    %17 = arith.addf %13, %16 : vector<16x1xf32>
    %18 = math.rsqrt %17 : vector<16x1xf32>
    %19 = vector.broadcast %18 : vector<16x1xf32> to vector<16x32xf32>
    %20 = arith.mulf %15, %19 : vector<16x32xf32>
    %21 = vector.broadcast %1 : vector<1x32xf32> to vector<16x32xf32>
    %22 = arith.mulf %21, %20 : vector<16x32xf32>
    %23 = vector.broadcast %2 : vector<1x32xf32> to vector<16x32xf32>
    %24 = arith.addf %22, %23 : vector<16x32xf32>
    %c0_9 = arith.constant 0 : index
    %c0_10 = arith.constant 0 : index
    %25 = vector.load %arg4[%c0_9, %c0_10] : memref<32x96xf32, #tpu.memory_space<vmem>>, vector<32x96xf32>
    %cst_11 = arith.constant dense<0.000000e+00> : vector<16x96xf32>
    %26 = tpu.matmul %24, %25, %cst_11 {dimension_numbers = #tpu.dot_dimension_numbers<[1], [0], [0], [1], [0, 0, 1, 1], [], []>} : vector<16x32xf32>, vector<32x96xf32>, vector<16x96xf32> -> vector<16x96xf32>
    %27 = vector.shape_cast %26 : vector<16x96xf32> to vector<2x8x96xf32>
    %28 = vector.extract_strided_slice %27 {offsets = [0, 0, 0], sizes = [2, 8, 32], strides = [1, 1, 1]} : vector<2x8x96xf32> to vector<2x8x32xf32>
    %29 = vector.extract_strided_slice %27 {offsets = [0, 0, 32], sizes = [2, 8, 32], strides = [1, 1, 1]} : vector<2x8x96xf32> to vector<2x8x32xf32>
    %30 = vector.extract_strided_slice %27 {offsets = [0, 0, 64], sizes = [2, 8, 32], strides = [1, 1, 1]} : vector<2x8x96xf32> to vector<2x8x32xf32>
    %31 = tpu.iota {dimensions = array<i32: 0>} : vector<8x8xi32>
    %32 = tpu.iota {dimensions = array<i32: 1>} : vector<8x8xi32>
    %33 = arith.cmpi sgt, %32, %31 : vector<8x8xi32>
    %cst_12 = arith.constant -1.000000e+30 : f32
    %cst_13 = arith.constant 0.000000e+00 : f32
    %34 = vector.broadcast %cst_12 : f32 to vector<8x8xf32>
    %35 = vector.broadcast %cst_13 : f32 to vector<8x8xf32>
    %36 = arith.select %33, %34, %35 : vector<8x8xi1>, vector<8x8xf32>
    %37 = vector.extract_strided_slice %28 {offsets = [0, 0, 0], sizes = [2, 8, 8], strides = [1, 1, 1]} : vector<2x8x32xf32> to vector<2x8x8xf32>
    %38 = vector.extract_strided_slice %29 {offsets = [0, 0, 0], sizes = [2, 8, 8], strides = [1, 1, 1]} : vector<2x8x32xf32> to vector<2x8x8xf32>
    %39 = vector.extract_strided_slice %30 {offsets = [0, 0, 0], sizes = [2, 8, 8], strides = [1, 1, 1]} : vector<2x8x32xf32> to vector<2x8x8xf32>
    "tpu.trace_start"() <{level = 10 : i32, message = "bqd,bkd->bqk"}> : () -> ()
    %cst_14 = arith.constant dense<0.000000e+00> : vector<2x8x8xf32>
    %40 = tpu.matmul %37, %38, %cst_14 {dimension_numbers = #tpu.dot_dimension_numbers<[2], [2], [1], [1], [0, 0, 0, 1, 1, 1], [0], [0]>} : vector<2x8x8xf32>, vector<2x8x8xf32>, vector<2x8x8xf32> -> vector<2x8x8xf32>
    "tpu.trace_stop"() : () -> ()
    %cst_15 = arith.constant 0.353553385 : f32
    %41 = vector.broadcast %cst_15 : f32 to vector<2x8x8xf32>
    %42 = arith.mulf %40, %41 : vector<2x8x8xf32>
    %43 = vector.shape_cast %36 : vector<8x8xf32> to vector<1x8x8xf32>
    %44 = vector.broadcast %43 : vector<1x8x8xf32> to vector<2x8x8xf32>
    %45 = arith.addf %42, %44 : vector<2x8x8xf32>
    %cst_16 = arith.constant dense<0xFF800000> : vector<2x8xf32>
    %46 = vector.multi_reduction <maximumf>, %45, %cst_16 [2] : vector<2x8x8xf32> to vector<2x8xf32>
    %47 = vector.shape_cast %46 : vector<2x8xf32> to vector<2x8x1xf32>
    %48 = vector.broadcast %47 : vector<2x8x1xf32> to vector<2x8x8xf32>
    %49 = arith.subf %45, %48 : vector<2x8x8xf32>
    %50 = math.exp %49 : vector<2x8x8xf32>
    %cst_17 = arith.constant dense<0.000000e+00> : vector<2x8xf32>
    %51 = vector.multi_reduction <add>, %50, %cst_17 [2] : vector<2x8x8xf32> to vector<2x8xf32>
    %52 = vector.shape_cast %51 : vector<2x8xf32> to vector<2x8x1xf32>
    %53 = tpu.reciprocal %52 {approx = true} : vector<2x8x1xf32> -> vector<2x8x1xf32>
    %54 = vector.broadcast %53 : vector<2x8x1xf32> to vector<2x8x8xf32>
    %55 = arith.mulf %50, %54 : vector<2x8x8xf32>
    "tpu.trace_start"() <{level = 10 : i32, message = "bqk,bkd->bqd"}> : () -> ()
    %cst_18 = arith.constant dense<0.000000e+00> : vector<2x8x8xf32>
    %56 = tpu.matmul %55, %39, %cst_18 {dimension_numbers = #tpu.dot_dimension_numbers<[2], [1], [1], [2], [0, 0, 0, 1, 1, 2], [0], [0]>} : vector<2x8x8xf32>, vector<2x8x8xf32>, vector<2x8x8xf32> -> vector<2x8x8xf32>
    "tpu.trace_stop"() : () -> ()
    %57 = vector.extract_strided_slice %28 {offsets = [0, 0, 8], sizes = [2, 8, 8], strides = [1, 1, 1]} : vector<2x8x32xf32> to vector<2x8x8xf32>
    %58 = vector.extract_strided_slice %29 {offsets = [0, 0, 8], sizes = [2, 8, 8], strides = [1, 1, 1]} : vector<2x8x32xf32> to vector<2x8x8xf32>
    %59 = vector.extract_strided_slice %30 {offsets = [0, 0, 8], sizes = [2, 8, 8], strides = [1, 1, 1]} : vector<2x8x32xf32> to vector<2x8x8xf32>
    "tpu.trace_start"() <{level = 10 : i32, message = "bqd,bkd->bqk"}> : () -> ()
    %cst_19 = arith.constant dense<0.000000e+00> : vector<2x8x8xf32>
    %60 = tpu.matmul %57, %58, %cst_19 {dimension_numbers = #tpu.dot_dimension_numbers<[2], [2], [1], [1], [0, 0, 0, 1, 1, 1], [0], [0]>} : vector<2x8x8xf32>, vector<2x8x8xf32>, vector<2x8x8xf32> -> vector<2x8x8xf32>
    "tpu.trace_stop"() : () -> ()
    %cst_20 = arith.constant 0.353553385 : f32
    %61 = vector.broadcast %cst_20 : f32 to vector<2x8x8xf32>
    %62 = arith.mulf %60, %61 : vector<2x8x8xf32>
    %63 = vector.shape_cast %36 : vector<8x8xf32> to vector<1x8x8xf32>
    %64 = vector.broadcast %63 : vector<1x8x8xf32> to vector<2x8x8xf32>
    %65 = arith.addf %62, %64 : vector<2x8x8xf32>
    %cst_21 = arith.constant dense<0xFF800000> : vector<2x8xf32>
    %66 = vector.multi_reduction <maximumf>, %65, %cst_21 [2] : vector<2x8x8xf32> to vector<2x8xf32>
    %67 = vector.shape_cast %66 : vector<2x8xf32> to vector<2x8x1xf32>
    %68 = vector.broadcast %67 : vector<2x8x1xf32> to vector<2x8x8xf32>
    %69 = arith.subf %65, %68 : vector<2x8x8xf32>
    %70 = math.exp %69 : vector<2x8x8xf32>
    %cst_22 = arith.constant dense<0.000000e+00> : vector<2x8xf32>
    %71 = vector.multi_reduction <add>, %70, %cst_22 [2] : vector<2x8x8xf32> to vector<2x8xf32>
    %72 = vector.shape_cast %71 : vector<2x8xf32> to vector<2x8x1xf32>
    %73 = tpu.reciprocal %72 {approx = true} : vector<2x8x1xf32> -> vector<2x8x1xf32>
    %74 = vector.broadcast %73 : vector<2x8x1xf32> to vector<2x8x8xf32>
    %75 = arith.mulf %70, %74 : vector<2x8x8xf32>
    "tpu.trace_start"() <{level = 10 : i32, message = "bqk,bkd->bqd"}> : () -> ()
    %cst_23 = arith.constant dense<0.000000e+00> : vector<2x8x8xf32>
    %76 = tpu.matmul %75, %59, %cst_23 {dimension_numbers = #tpu.dot_dimension_numbers<[2], [1], [1], [2], [0, 0, 0, 1, 1, 2], [0], [0]>} : vector<2x8x8xf32>, vector<2x8x8xf32>, vector<2x8x8xf32> -> vector<2x8x8xf32>
    "tpu.trace_stop"() : () -> ()
    %77 = vector.extract_strided_slice %28 {offsets = [0, 0, 16], sizes = [2, 8, 8], strides = [1, 1, 1]} : vector<2x8x32xf32> to vector<2x8x8xf32>
    %78 = vector.extract_strided_slice %29 {offsets = [0, 0, 16], sizes = [2, 8, 8], strides = [1, 1, 1]} : vector<2x8x32xf32> to vector<2x8x8xf32>
    %79 = vector.extract_strided_slice %30 {offsets = [0, 0, 16], sizes = [2, 8, 8], strides = [1, 1, 1]} : vector<2x8x32xf32> to vector<2x8x8xf32>
    "tpu.trace_start"() <{level = 10 : i32, message = "bqd,bkd->bqk"}> : () -> ()
    %cst_24 = arith.constant dense<0.000000e+00> : vector<2x8x8xf32>
    %80 = tpu.matmul %77, %78, %cst_24 {dimension_numbers = #tpu.dot_dimension_numbers<[2], [2], [1], [1], [0, 0, 0, 1, 1, 1], [0], [0]>} : vector<2x8x8xf32>, vector<2x8x8xf32>, vector<2x8x8xf32> -> vector<2x8x8xf32>
    "tpu.trace_stop"() : () -> ()
    %cst_25 = arith.constant 0.353553385 : f32
    %81 = vector.broadcast %cst_25 : f32 to vector<2x8x8xf32>
    %82 = arith.mulf %80, %81 : vector<2x8x8xf32>
    %83 = vector.shape_cast %36 : vector<8x8xf32> to vector<1x8x8xf32>
    %84 = vector.broadcast %83 : vector<1x8x8xf32> to vector<2x8x8xf32>
    %85 = arith.addf %82, %84 : vector<2x8x8xf32>
    %cst_26 = arith.constant dense<0xFF800000> : vector<2x8xf32>
    %86 = vector.multi_reduction <maximumf>, %85, %cst_26 [2] : vector<2x8x8xf32> to vector<2x8xf32>
    %87 = vector.shape_cast %86 : vector<2x8xf32> to vector<2x8x1xf32>
    %88 = vector.broadcast %87 : vector<2x8x1xf32> to vector<2x8x8xf32>
    %89 = arith.subf %85, %88 : vector<2x8x8xf32>
    %90 = math.exp %89 : vector<2x8x8xf32>
    %cst_27 = arith.constant dense<0.000000e+00> : vector<2x8xf32>
    %91 = vector.multi_reduction <add>, %90, %cst_27 [2] : vector<2x8x8xf32> to vector<2x8xf32>
    %92 = vector.shape_cast %91 : vector<2x8xf32> to vector<2x8x1xf32>
    %93 = tpu.reciprocal %92 {approx = true} : vector<2x8x1xf32> -> vector<2x8x1xf32>
    %94 = vector.broadcast %93 : vector<2x8x1xf32> to vector<2x8x8xf32>
    %95 = arith.mulf %90, %94 : vector<2x8x8xf32>
    "tpu.trace_start"() <{level = 10 : i32, message = "bqk,bkd->bqd"}> : () -> ()
    %cst_28 = arith.constant dense<0.000000e+00> : vector<2x8x8xf32>
    %96 = tpu.matmul %95, %79, %cst_28 {dimension_numbers = #tpu.dot_dimension_numbers<[2], [1], [1], [2], [0, 0, 0, 1, 1, 2], [0], [0]>} : vector<2x8x8xf32>, vector<2x8x8xf32>, vector<2x8x8xf32> -> vector<2x8x8xf32>
    "tpu.trace_stop"() : () -> ()
    %97 = vector.extract_strided_slice %28 {offsets = [0, 0, 24], sizes = [2, 8, 8], strides = [1, 1, 1]} : vector<2x8x32xf32> to vector<2x8x8xf32>
    %98 = vector.extract_strided_slice %29 {offsets = [0, 0, 24], sizes = [2, 8, 8], strides = [1, 1, 1]} : vector<2x8x32xf32> to vector<2x8x8xf32>
    %99 = vector.extract_strided_slice %30 {offsets = [0, 0, 24], sizes = [2, 8, 8], strides = [1, 1, 1]} : vector<2x8x32xf32> to vector<2x8x8xf32>
    "tpu.trace_start"() <{level = 10 : i32, message = "bqd,bkd->bqk"}> : () -> ()
    %cst_29 = arith.constant dense<0.000000e+00> : vector<2x8x8xf32>
    %100 = tpu.matmul %97, %98, %cst_29 {dimension_numbers = #tpu.dot_dimension_numbers<[2], [2], [1], [1], [0, 0, 0, 1, 1, 1], [0], [0]>} : vector<2x8x8xf32>, vector<2x8x8xf32>, vector<2x8x8xf32> -> vector<2x8x8xf32>
    "tpu.trace_stop"() : () -> ()
    %cst_30 = arith.constant 0.353553385 : f32
    %101 = vector.broadcast %cst_30 : f32 to vector<2x8x8xf32>
    %102 = arith.mulf %100, %101 : vector<2x8x8xf32>
    %103 = vector.shape_cast %36 : vector<8x8xf32> to vector<1x8x8xf32>
    %104 = vector.broadcast %103 : vector<1x8x8xf32> to vector<2x8x8xf32>
    %105 = arith.addf %102, %104 : vector<2x8x8xf32>
    %cst_31 = arith.constant dense<0xFF800000> : vector<2x8xf32>
    %106 = vector.multi_reduction <maximumf>, %105, %cst_31 [2] : vector<2x8x8xf32> to vector<2x8xf32>
    %107 = vector.shape_cast %106 : vector<2x8xf32> to vector<2x8x1xf32>
    %108 = vector.broadcast %107 : vector<2x8x1xf32> to vector<2x8x8xf32>
    %109 = arith.subf %105, %108 : vector<2x8x8xf32>
    %110 = math.exp %109 : vector<2x8x8xf32>
    %cst_32 = arith.constant dense<0.000000e+00> : vector<2x8xf32>
    %111 = vector.multi_reduction <add>, %110, %cst_32 [2] : vector<2x8x8xf32> to vector<2x8xf32>
    %112 = vector.shape_cast %111 : vector<2x8xf32> to vector<2x8x1xf32>
    %113 = tpu.reciprocal %112 {approx = true} : vector<2x8x1xf32> -> vector<2x8x1xf32>
    %114 = vector.broadcast %113 : vector<2x8x1xf32> to vector<2x8x8xf32>
    %115 = arith.mulf %110, %114 : vector<2x8x8xf32>
    "tpu.trace_start"() <{level = 10 : i32, message = "bqk,bkd->bqd"}> : () -> ()
    %cst_33 = arith.constant dense<0.000000e+00> : vector<2x8x8xf32>
    %116 = tpu.matmul %115, %99, %cst_33 {dimension_numbers = #tpu.dot_dimension_numbers<[2], [1], [1], [2], [0, 0, 0, 1, 1, 2], [0], [0]>} : vector<2x8x8xf32>, vector<2x8x8xf32>, vector<2x8x8xf32> -> vector<2x8x8xf32>
    "tpu.trace_stop"() : () -> ()
    %117 = tpu.concatenate %56, %76, %96, %116 in 2 : vector<2x8x8xf32>, vector<2x8x8xf32>, vector<2x8x8xf32>, vector<2x8x8xf32> -> vector<2x8x32xf32>
    %118 = vector.shape_cast %117 : vector<2x8x32xf32> to vector<16x32xf32>
    %c0_34 = arith.constant 0 : index
    %c0_35 = arith.constant 0 : index
    %119 = vector.load %arg5[%c0_34, %c0_35] : memref<32x32xf32, #tpu.memory_space<vmem>>, vector<32x32xf32>
    %cst_36 = arith.constant dense<0.000000e+00> : vector<16x32xf32>
    %120 = tpu.matmul %118, %119, %cst_36 {dimension_numbers = #tpu.dot_dimension_numbers<[1], [0], [0], [1], [0, 0, 1, 1], [], []>} : vector<16x32xf32>, vector<32x32xf32>, vector<16x32xf32> -> vector<16x32xf32>
    %c0_37 = arith.constant 0 : index
    %c0_38 = arith.constant 0 : index
    %121 = vector.load %arg6[%c0_37, %c0_38] : memref<1x32xf32, #tpu.memory_space<vmem>>, vector<1x32xf32>
    %122 = vector.broadcast %121 : vector<1x32xf32> to vector<16x32xf32>
    %123 = arith.addf %120, %122 : vector<16x32xf32>
    %124 = arith.addf %0, %123 : vector<16x32xf32>
    %c0_39 = arith.constant 0 : index
    %c0_40 = arith.constant 0 : index
    %125 = vector.load %arg7[%c0_39, %c0_40] : memref<1x32xf32, #tpu.memory_space<vmem>>, vector<1x32xf32>
    %c0_41 = arith.constant 0 : index
    %c0_42 = arith.constant 0 : index
    %126 = vector.load %arg8[%c0_41, %c0_42] : memref<1x32xf32, #tpu.memory_space<vmem>>, vector<1x32xf32>
    %cst_43 = arith.constant dense<0.000000e+00> : vector<16xf32>
    %127 = vector.multi_reduction <add>, %124, %cst_43 [1] : vector<16x32xf32> to vector<16xf32>
    %128 = vector.shape_cast %127 : vector<16xf32> to vector<16x1xf32>
    %cst_44 = arith.constant 3.200000e+01 : f32
    %129 = vector.broadcast %cst_44 : f32 to vector<16x1xf32>
    %130 = arith.divf %128, %129 : vector<16x1xf32>
    %131 = vector.broadcast %130 : vector<16x1xf32> to vector<16x32xf32>
    %132 = arith.subf %124, %131 : vector<16x32xf32>
    %133 = arith.mulf %132, %132 : vector<16x32xf32>
    %cst_45 = arith.constant dense<0.000000e+00> : vector<16xf32>
    %134 = vector.multi_reduction <add>, %133, %cst_45 [1] : vector<16x32xf32> to vector<16xf32>
    %135 = vector.shape_cast %134 : vector<16xf32> to vector<16x1xf32>
    %cst_46 = arith.constant 3.200000e+01 : f32
    %136 = vector.broadcast %cst_46 : f32 to vector<16x1xf32>
    %137 = arith.divf %135, %136 : vector<16x1xf32>
    %138 = vector.broadcast %130 : vector<16x1xf32> to vector<16x32xf32>
    %139 = arith.subf %124, %138 : vector<16x32xf32>
    %cst_47 = arith.constant 9.99999974E-6 : f32
    %140 = vector.broadcast %cst_47 : f32 to vector<16x1xf32>
    %141 = arith.addf %137, %140 : vector<16x1xf32>
    %142 = math.rsqrt %141 : vector<16x1xf32>
    %143 = vector.broadcast %142 : vector<16x1xf32> to vector<16x32xf32>
    %144 = arith.mulf %139, %143 : vector<16x32xf32>
    %145 = vector.broadcast %125 : vector<1x32xf32> to vector<16x32xf32>
    %146 = arith.mulf %145, %144 : vector<16x32xf32>
    %147 = vector.broadcast %126 : vector<1x32xf32> to vector<16x32xf32>
    %148 = arith.addf %146, %147 : vector<16x32xf32>
    %c0_48 = arith.constant 0 : index
    %c0_49 = arith.constant 0 : index
    %149 = vector.load %arg9[%c0_48, %c0_49] : memref<32x128xf32, #tpu.memory_space<vmem>>, vector<32x128xf32>
    %cst_50 = arith.constant dense<0.000000e+00> : vector<16x128xf32>
    %150 = tpu.matmul %148, %149, %cst_50 {dimension_numbers = #tpu.dot_dimension_numbers<[1], [0], [0], [1], [0, 0, 1, 1], [], []>} : vector<16x32xf32>, vector<32x128xf32>, vector<16x128xf32> -> vector<16x128xf32>
    %c0_51 = arith.constant 0 : index
    %c0_52 = arith.constant 0 : index
    %151 = vector.load %arg10[%c0_51, %c0_52] : memref<1x128xf32, #tpu.memory_space<vmem>>, vector<1x128xf32>
    %152 = vector.broadcast %151 : vector<1x128xf32> to vector<16x128xf32>
    %153 = arith.addf %150, %152 : vector<16x128xf32>
    %cst_53 = arith.constant 5.000000e-01 : f32
    %154 = vector.broadcast %cst_53 : f32 to vector<16x128xf32>
    %155 = arith.mulf %154, %153 : vector<16x128xf32>
    %cst_54 = arith.constant 4.471500e-02 : f32
    %156 = vector.broadcast %cst_54 : f32 to vector<16x128xf32>
    %157 = arith.mulf %156, %153 : vector<16x128xf32>
    %158 = arith.mulf %157, %153 : vector<16x128xf32>
    %159 = arith.mulf %158, %153 : vector<16x128xf32>
    %160 = arith.addf %153, %159 : vector<16x128xf32>
    %cst_55 = arith.constant 0.797884583 : f32
    %161 = vector.broadcast %cst_55 : f32 to vector<16x128xf32>
    %162 = arith.mulf %161, %160 : vector<16x128xf32>
    %163 = math.tanh %162 : vector<16x128xf32>
    %cst_56 = arith.constant 1.000000e+00 : f32
    %164 = vector.broadcast %cst_56 : f32 to vector<16x128xf32>
    %165 = arith.addf %164, %163 : vector<16x128xf32>
    %166 = arith.mulf %155, %165 : vector<16x128xf32>
    %c0_57 = arith.constant 0 : index
    %c0_58 = arith.constant 0 : index
    %167 = vector.load %arg11[%c0_57, %c0_58] : memref<128x32xf32, #tpu.memory_space<vmem>>, vector<128x32xf32>
    %cst_59 = arith.constant dense<0.000000e+00> : vector<16x32xf32>
    %168 = tpu.matmul %166, %167, %cst_59 {dimension_numbers = #tpu.dot_dimension_numbers<[1], [0], [0], [1], [0, 0, 1, 1], [], []>} : vector<16x128xf32>, vector<128x32xf32>, vector<16x32xf32> -> vector<16x32xf32>
    %c0_60 = arith.constant 0 : index
    %c0_61 = arith.constant 0 : index
    %169 = vector.load %arg12[%c0_60, %c0_61] : memref<1x32xf32, #tpu.memory_space<vmem>>, vector<1x32xf32>
    %170 = vector.broadcast %169 : vector<1x32xf32> to vector<16x32xf32>
    %171 = arith.addf %168, %170 : vector<16x32xf32>
    %172 = arith.addf %124, %171 : vector<16x32xf32>
    %c0_62 = arith.constant 0 : index
    %c0_63 = arith.constant 0 : index
    %173 = vector.load %arg13[%c0_62, %c0_63] : memref<16x32xf32, #tpu.memory_space<vmem>>, vector<16x32xf32>
    tpu.vector_store %arg13[%c0_62, %c0_63], %172 {strides = array<i32>} : memref<16x32xf32, #tpu.memory_space<vmem>>, vector<16x32xf32>,
    return
  }
  func.func @transform_0(%arg0: i32) -> (i32, i32) {
    %c0_i32 = arith.constant 0 : i32
    %c0_i32_0 = arith.constant 0 : i32
    %c0_i32_1 = arith.constant 0 : i32
    return %c0_i32, %c0_i32_0 : i32, i32
  }
  func.func @transform_1(%arg0: i32) -> (i32, i32) {
    %c0_i32 = arith.constant 0 : i32
    %c0_i32_0 = arith.constant 0 : i32
    %c0_i32_1 = arith.constant 0 : i32
    return %c0_i32, %c0_i32_0 : i32, i32
  }
  func.func @transform_2(%arg0: i32) -> (i32, i32) {
    %c0_i32 = arith.constant 0 : i32
    %c0_i32_0 = arith.constant 0 : i32
    %c0_i32_1 = arith.constant 0 : i32
    return %c0_i32, %c0_i32_0 : i32, i32
  }
  func.func @transform_3(%arg0: i32) -> (i32, i32) {
    %c0_i32 = arith.constant 0 : i32
    %c0_i32_0 = arith.constant 0 : i32
    %c0_i32_1 = arith.constant 0 : i32
    return %c0_i32, %c0_i32_0 : i32, i32
  }
  func.func @transform_4(%arg0: i32) -> (i32, i32) {
    %c0_i32 = arith.constant 0 : i32
    %c0_i32_0 = arith.constant 0 : i32
    %c0_i32_1 = arith.constant 0 : i32
    return %c0_i32, %c0_i32_0 : i32, i32
  }
  func.func @transform_5(%arg0: i32) -> (i32, i32) {
    %c0_i32 = arith.constant 0 : i32
    %c0_i32_0 = arith.constant 0 : i32
    %c0_i32_1 = arith.constant 0 : i32
    return %c0_i32, %c0_i32_0 : i32, i32
  }
  func.func @transform_6(%arg0: i32) -> (i32, i32) {
    %c0_i32 = arith.constant 0 : i32
    %c0_i32_0 = arith.constant 0 : i32
    %c0_i32_1 = arith.constant 0 : i32
    return %c0_i32, %c0_i32_0 : i32, i32
  }
  func.func @transform_7(%arg0: i32) -> (i32, i32) {
    %c0_i32 = arith.constant 0 : i32
    %c0_i32_0 = arith.constant 0 : i32
    %c0_i32_1 = arith.constant 0 : i32
    return %c0_i32, %c0_i32_0 : i32, i32
  }
  func.func @transform_8(%arg0: i32) -> (i32, i32) {
    %c0_i32 = arith.constant 0 : i32
    %c0_i32_0 = arith.constant 0 : i32
    %c0_i32_1 = arith.constant 0 : i32
    return %c0_i32, %c0_i32_0 : i32, i32
  }
  func.func @transform_9(%arg0: i32) -> (i32, i32) {
    %c0_i32 = arith.constant 0 : i32
    %c0_i32_0 = arith.constant 0 : i32
    %c0_i32_1 = arith.constant 0 : i32
    return %c0_i32, %c0_i32_0 : i32, i32
  }
  func.func @transform_10(%arg0: i32) -> (i32, i32) {
    %c0_i32 = arith.constant 0 : i32
    %c0_i32_0 = arith.constant 0 : i32
    %c0_i32_1 = arith.constant 0 : i32
    return %c0_i32, %c0_i32_0 : i32, i32
  }
  func.func @transform_11(%arg0: i32) -> (i32, i32) {
    %c0_i32 = arith.constant 0 : i32
    %c0_i32_0 = arith.constant 0 : i32
    %c0_i32_1 = arith.constant 0 : i32
    return %c0_i32, %c0_i32_0 : i32, i32
  }
  func.func @transform_12(%arg0: i32) -> (i32, i32) {
    %c0_i32 = arith.constant 0 : i32
    %c0_i32_0 = arith.constant 0 : i32
    %c0_i32_1 = arith.constant 0 : i32
    return %c0_i32, %c0_i32_0 : i32, i32
  }
}

</mosaic_0001>

<bundles_post_ra>
// kernel: tpu_custom_call.1
= control target key start
LH: loop header
LB: loop body
LE: loop exit
PB: predicated region body
PF: predicated region fallthrough
CT: control target
= control target key end

     0   :  { %vm46_vm0 = vcmask 261120   ;;  %s1399_s0 = inlined_call_operand.vmem [shape: f32[16,32], index: 0, kind: input, shape index: {}]   ;;  %s1400_s1 = inlined_call_operand.vmem [shape: f32[1,32], index: 1, kind: input, shape index: {}]   ;;  %s1401_s2 = inlined_call_operand.vmem [shape: f32[1,32], index: 2, kind: input, shape index: {}]   ;;  %s1402_s3 = inlined_call_operand.vmem [shape: f32[32,96], index: 3, kind: input, shape index: {}]   ;;  %s1403_s4 = inlined_call_operand.vmem [shape: f32[32,32], index: 4, kind: input, shape index: {}]   ;;  %s1404_s5 = inlined_call_operand.vmem [shape: f32[1,32], index: 5, kind: input, shape index: {}]   ;;  %s1405_s6 = inlined_call_operand.vmem [shape: f32[1,32], index: 6, kind: input, shape index: {}]   ;;  %s1406_s7 = inlined_call_operand.vmem [shape: f32[1,32], index: 7, kind: input, shape index: {}]   ;;  %s1407_s8 = inlined_call_operand.vmem [shape: f32[32,128], index: 8, kind: input, shape index: {}]   ;;  %s1408_s9 = inlined_call_operand.vmem [shape: f32[1,128], index: 9, kind: input, shape index: {}]   ;;  %s1409_s10 = inlined_call_operand.vmem [shape: f32[128,32], index: 10, kind: input, shape index: {}]   ;;  %s1410_s11 = inlined_call_operand.vmem [shape: f32[1,32], index: 11, kind: input, shape index: {}]   ;;  %s1411_s12 = inlined_call_operand.hbm [shape: f32[16,32], index: 12, kind: output, shape index: {}]  }
   0x1   :  { %v1142_v0 = vld [vmem:[%s1399_s0] sm:$0xff] }
   0x2   :  { %v47_v1 = vsel %vm46_vm0, %v1142_v0, 0.0 }
   0x3   :  { %48 = vadd.xlane.f32.xlu0 %v47_v1 }
   0x4   :  { %17 = vsyncpa [#allocation3], 0  ;;  %v1149_v2 = vld [vmem:[%s1399_s0 + $0x8] sm:$0xff]  ;;  %v1056_v4 = vmov 32.0   ;;  %v111_v21 = vld [vmem:[%s1402_s3 + $0x18] sm:$0xff]  ;;  %vm150_vm8 = vcmask 64512   ;;  %v141_v57 = vlaneseq }
   0x5   :  { %v50_v3 = vsel %vm46_vm0, %v1149_v2, 0.0  ;;  %984 = vrcp.f32 %v1056_v4  ;;  %130 = vmatpush.msra.mxu0 %v111_v21  ;;  %v110_v22 = vld [vmem:[%s1402_s3 + $0x10] sm:$0xff]  ;;  %v109_v23 = vld [vmem:[%s1402_s3 + $0x8] sm:$0xff]  ;;  %v108_v24 = vld [vmem:[%s1402_s3] sm:$0xff]  ;;  %v1058_v61 = vmov 0.0   ;;  %s1060_s17 = smov 88  }
   0x6   :  { %v977_v39 = vld [vmem:[%s1400_s1] ss:$0 sm:$0xff]  ;;  %s1057_s1 = smov 96   ;;  %v142_v58 = vshrl.u32 %v141_v57, 7  ;;  %v144_v59 = vand.u32 127, %v141_v57  ;;  %s1061_s18 = smov 120  }
   0x7   :  { %131 = vmatpush.msra.mxu0 %v110_v22  ;;  %v978_v43 = vld [vmem:[%s1401_s2] ss:$0 sm:$0xff]  ;;  %s1059_s2 = smov 64   ;;  %s1062_s19 = smov 56   ;;  %vm708_vm10 = vcmask 130048   ;;  %vm711_vm11 = vcmask 195584  }
   0x8   :  { %vm145_vm9 = vcmp.gt.s32.totalorder %v144_v59, %v142_v58  ;;  %s1063_s20 = smov 80   ;;  %s1064_s21 = smov 104  }
   0x9   :  { %132 = vmatpush.msra.mxu0 %v109_v23  ;;  %v1195_v62 = vsel %vm145_vm9, -1e+30, %v1058_v61  ;;  %s1065_s22 = smov 112   ;;  %s1066_s23 = smov 72  }
   0xa   :  { %s1067_s24 = smov 48   ;;  %s1068_s0 = smov 40  }
   0xb   :  { %51 = vadd.xlane.f32.xlu0 %v50_v3  ;;  %v985_v5 = vpop.eup %984  ;;  %133 = vmatpush.msra.mxu0 %v108_v24  ;;  %s1069_s25 = smov 8   ;;  %s1070_s26 = smov 16  }
   0xc   :  { %v54_v6 = vmul.f32 32.0, %v985_v5  ;;  %vm58_vm1 = vweird.f32 %v985_v5  ;;  %s1071_s27 = smov 24   ;;  %s1072_s3 = smov [#allocation2]  }
   0xd   :  { %s915_s14 = sshll.u32 %s1072_s3, 4  ;;  %s916_s14 = int_to_ptr.vmem [resolvable:$true] %s915_s14 }
   0xe   :  { %v55_v7 = vsub.f32 1.0, %v54_v6 }
  0x10   :  { %v56_v8 = vmul.f32 %v985_v5, %v55_v7 }
  0x12   :  { %v57_v9 = vadd.f32 %v985_v5, %v56_v8 }
  0x14   :  { %v1153_v10 = vsel %vm58_vm1, %v985_v5, %v57_v9 }
  0x76   :  { %v49_v11 = vpop.xlane.xlu0 %48 }
  0x77   :  { %v60_v12 = vmul.f32 %v1153_v10, %v49_v11 }
  0x79   :  { %v62_v13 = vsub.f32 %v1142_v0, %v60_v12 }
  0x7b   :  { %v64_v14 = vmul.f32 %v62_v13, %v62_v13 }
  0x7d   :  { %v66_v15 = vsel %vm46_vm0, %v64_v14, 0.0 }
  0x7e   :  { %67 = vadd.xlane.f32.xlu1 %v66_v15  ;;  %v52_v16 = vpop.xlane.xlu0 %51 }
  0x7f   :  { %v61_v17 = vmul.f32 %v1153_v10, %v52_v16 }
  0x81   :  { %v63_v18 = vsub.f32 %v1149_v2, %v61_v17 }
  0x83   :  { %v65_v19 = vmul.f32 %v63_v18, %v63_v18 }
  0x85   :  { %v69_v20 = vsel %vm46_vm0, %v65_v19, 0.0 }
  0x86   :  { %70 = vadd.xlane.f32.xlu1 %v69_v20 }
  0xf1   :  { %v68_v25 = vpop.xlane.xlu1 %67 }
  0xf2   :  { %v72_v26 = vmul.f32 %v68_v25, %v1153_v10 }
  0xf4   :  { %v74_v27 = vadd.f32 1e-05, %v72_v26 }
  0xf6   :  { %986 = vrsqrt.f32 %v74_v27  ;;  %vm82_vm3 = vweird.f32 %v74_v27 }
  0xf9   :  { %v71_v28 = vpop.xlane.xlu1 %70 }
  0xfa   :  { %v73_v29 = vmul.f32 %v71_v28, %v1153_v10 }
  0xfc   :  { %v987_v30 = vpop.eup %986  ;;  %v75_v31 = vadd.f32 1e-05, %v73_v29 }
  0xfd   :  { %v77_v32 = vmul.f32 %v987_v30, %v74_v27  ;;  %vm83_vm2 = vweird.f32 %v987_v30 }
  0xfe   :  { %988 = vrsqrt.f32 %v75_v31  ;;  %vm84_vm4 = vmor %vm82_vm3, %vm83_vm2  ;;  %vm92_vm6 = vweird.f32 %v75_v31 }
  0xff   :  { %v78_v33 = vmul.f32 %v987_v30, %v77_v32 }
 0x101   :  { %v79_v34 = vmul.f32 0.5, %v78_v33 }
 0x103   :  { %v80_v35 = vsub.f32 1.5, %v79_v34 }
 0x104   :  { %v989_v36 = vpop.eup %988 }
 0x105   :  { %v81_v37 = vmul.f32 %v987_v30, %v80_v35  ;;  %v87_v38 = vmul.f32 %v989_v36, %v75_v31  ;;  %vm93_vm5 = vweird.f32 %v989_v36 }
 0x106   :  { %vm94_vm7 = vmor %vm92_vm6, %vm93_vm5 }
 0x107   :  { %v85_v40 = vsel %vm84_vm4, %v987_v30, %v81_v37  ;;  %v88_v41 = vmul.f32 %v989_v36, %v87_v38 }
 0x108   :  { %v96_v42 = vmul.f32 %v85_v40, %v62_v13 }
 0x109   :  { %v89_v44 = vmul.f32 0.5, %v88_v41 }
 0x10a   :  { %v101_v45 = vmul.f32 %v977_v39, %v96_v42 }
 0x10b   :  { %v90_v46 = vsub.f32 1.5, %v89_v44 }
 0x10c   :  { %v106_v47 = vadd.f32 %v978_v43, %v101_v45 }
 0x10d   :  { %v91_v48 = vmul.f32 %v989_v36, %v90_v46 }
 0x10e   :  { %929 = vmatmul.msk.f32.vlgmr.msra.gmra.mxu0 %vm46_vm0, %v106_v47 }
 0x10f   :  { %v95_v49 = vsel %vm94_vm7, %v989_v36, %v91_v48 }
 0x110   :  { %v97_v50 = vmul.f32 %v95_v49, %v63_v18 }
 0x112   :  { %v102_v51 = vmul.f32 %v977_v39, %v97_v50 }
 0x114   :  { %v107_v52 = vadd.f32 %v978_v43, %v102_v51 }
 0x116   :  { %930 = vmatmul.msk.f32.gmra.mxu0 %vm46_vm0, %v107_v52 }
 0x18b   :  { %v1183_v53 = vpop.f32.mrf.mxu0 }
 0x18c   :  { %148 = vrot.lane.b32.xlu2 %v1183_v53, %s1057_s1 }
 0x193   :  { %v1186_v54 = vpop.f32.mrf.mxu0 }
 0x194   :  { %176 = vrot.lane.b32.xlu2 %v1186_v54, %s1057_s1 }
 0x1e6   :  { %v149_v55 = vpop.permute.xlu2 %148 }
 0x1e7   :  { %931 = vmatpush.xpose.msk.msra.mxu1 %vm150_vm8, %v149_v55 }
 0x1ea   :  { %932 = vmatmul.msk.f32.vlgmr.msra.gmra.mxu1 %vm150_vm8, %v1183_v53 }
 0x1ee   :  { %v177_v56 = vpop.permute.xlu2 %176 }
 0x1ef   :  { %933 = vmatpush.xpose.msk.msra.mxu2 %vm150_vm8, %v177_v56 }
 0x1f2   :  { %934 = vmatmul.msk.f32.vlgmr.msra.gmra.mxu2 %vm150_vm8, %v1186_v54 }
 0x267   :  { %v172_v60 = vpop.f32.mrf.mxu1 }
 0x268   :  { %v202_v63 = vmul.f32 0.35355338, %v172_v60 }
 0x26a   :  { %v204_v1 = vadd.f32 %v202_v63, %v1195_v62 }
 0x26c   :  { %v206_v3 = vsel %vm150_vm8, %v204_v1, -inf }
 0x26d   :  { %207 = vmax.xlane.f32.xlu0 %v206_v3 }
 0x275   :  { %v199_v4 = vpop.f32.mrf.mxu2 }
 0x276   :  { %v203_v5 = vmul.f32 0.35355338, %v199_v4 }
 0x278   :  { %v205_v6 = vadd.f32 %v203_v5, %v1195_v62 }
 0x27a   :  { %v209_v7 = vsel %vm150_vm8, %v205_v6, -inf }
 0x27b   :  { %210 = vmax.xlane.f32.xlu1 %v209_v7 }
 0x281   :  { %254 = vrot.lane.b32.xlu0 %v1186_v54, %s1059_s2 }
 0x294   :  { %228 = vrot.lane.b32.xlu1 %v1183_v53, %s1059_s2 }
 0x29c   :  { %282 = vrot.lane.b32.xlu1 %v1183_v53, %s1060_s17 }
 0x2e0   :  { %v208_v8 = vpop.xlane.xlu0 %207 }
 0x2e1   :  { %v212_v9 = vsub.f32 %v204_v1, %v208_v8 }
 0x2e3   :  { %v214_v11 = vmul.f32 1.442695, %v212_v9 }
 0x2e5   :  { %990 = vpow2.f32 %v214_v11 }
 0x2eb   :  { %v991_v12 = vpop.eup %990 }
 0x2ec   :  { %v218_v13 = vsel %vm150_vm8, %v991_v12, 0.0 }
 0x2ed   :  { %219 = vadd.xlane.f32.xlu2 %v218_v13 }
 0x2ee   :  { %v211_v14 = vpop.xlane.xlu1 %210 }
 0x2ef   :  { %v213_v15 = vsub.f32 %v205_v6, %v211_v14 }
 0x2f1   :  { %v216_v16 = vmul.f32 1.442695, %v213_v15 }
 0x2f3   :  { %992 = vpow2.f32 %v216_v16  ;;  %v255_v20 = vpop.permute.xlu0 %254 }
 0x2f9   :  { %v993_v17 = vpop.eup %992 }
 0x2fa   :  { %v221_v18 = vsel %vm150_vm8, %v993_v17, 0.0 }
 0x2fb   :  { %222 = vadd.xlane.f32.xlu0 %v221_v18 }
 0x305   :  { %310 = vrot.lane.b32.xlu2 %v1186_v54, %s1060_s17 }
 0x306   :  { %v229_v19 = vpop.permute.xlu1 %228 }
 0x307   :  { %249 = vmatpush.msrb.mxu1 %v229_v19 }
 0x309   :  { %275 = vmatpush.msra.mxu1 %v255_v20 }
 0x30d   :  { %308 = vrot.lane.b32.xlu2 %v1186_v54, %s1061_s18 }
 0x30e   :  { %v283_v25 = vpop.permute.xlu1 %282 }
 0x30f   :  { %280 = vrot.lane.b32.xlu0 %v1183_v53, %s1061_s18 }
 0x315   :  { %362 = vrot.lane.b32.xlu2 %v1183_v53, %s1062_s19 }
 0x31d   :  { %416 = vrot.lane.b32.xlu2 %v1183_v53, %s1063_s20 }
 0x325   :  { %548 = vrot.lane.b32.xlu2 %v1183_v53, %s1064_s21 }
 0x32d   :  { %444 = vrot.lane.b32.xlu2 %v1186_v54, %s1063_s20 }
 0x335   :  { %442 = vrot.lane.b32.xlu2 %v1186_v54, %s1065_s22 }
 0x360   :  { %v220_v21 = vpop.xlane.xlu2 %219 }
 0x361   :  { %994 = vrcp.f32 %v220_v21 }
 0x367   :  { %v995_v22 = vpop.eup %994 }
 0x368   :  { %v311_v23 = vpop.permute.xlu2 %310  ;;  %v226_v24 = vmul.f32 %v995_v22, %v991_v12 }
 0x369   :  { %939 = vmatpush.xpose.msk.msrb.mxu2 %vm150_vm8, %v311_v23 }
 0x36a   :  { %935 = vmatmul.msk.f32.vlgmr.msrb.gmra.mxu1 %vm150_vm8, %v226_v24 }
 0x36b   :  { %937 = vmatpush.xpose.msk.msrb.mxu1 %vm150_vm8, %v283_v25 }
 0x36e   :  { %v223_v26 = vpop.xlane.xlu0 %222 }
 0x36f   :  { %996 = vrcp.f32 %v223_v26 }
 0x370   :  { %v309_v27 = vpop.permute.xlu2 %308 }
 0x371   :  { %940 = vmatmul.msk.f32.vlgmr.msrb.gmra.mxu2 %vm150_vm8, %v309_v27 }
 0x375   :  { %v997_v28 = vpop.eup %996 }
 0x376   :  { %v227_v29 = vmul.f32 %v997_v28, %v993_v17 }
 0x378   :  { %v363_v30 = vpop.permute.xlu2 %362  ;;  %936 = vmatmul.msk.f32.vlgmr.msra.gmra.mxu1 %vm150_vm8, %v227_v29 }
 0x379   :  { %383 = vmatpush.msra.mxu2 %v363_v30 }
 0x380   :  { %v417_v31 = vpop.permute.xlu2 %416 }
 0x381   :  { %943 = vmatpush.xpose.msk.msrb.mxu2 %vm150_vm8, %v417_v31  ;;  %v281_v32 = vpop.permute.xlu0 %280 }
 0x382   :  { %938 = vmatmul.msk.f32.vlgmr.msrb.gmra.mxu1 %vm150_vm8, %v281_v32 }
 0x388   :  { %v549_v33 = vpop.permute.xlu2 %548 }
 0x390   :  { %v445_v34 = vpop.permute.xlu2 %444 }
 0x391   :  { %945 = vmatpush.xpose.msk.msrb.mxu0 %vm150_vm8, %v445_v34 }
 0x398   :  { %v443_v35 = vpop.permute.xlu2 %442 }
 0x399   :  { %946 = vmatmul.msk.f32.vlgmr.msrb.gmra.mxu0 %vm150_vm8, %v443_v35 }
 0x3e7   :  { %v1226_v36 = vpop.f32.mrf.mxu1 }
 0x3f4   :  { %v333_v47 = vpop.f32.mrf.mxu2 }
 0x3f5   :  { %v1228_v37 = vpop.f32.mrf.mxu1  ;;  %v337_v48 = vmul.f32 0.35355338, %v333_v47 }
 0x3f7   :  { %v339_v49 = vadd.f32 %v337_v48, %v1195_v62 }
 0x3f9   :  { %v343_v50 = vsel %vm150_vm8, %v339_v49, -inf }
 0x3ff   :  { %v305_v38 = vpop.f32.mrf.mxu1 }
 0x400   :  { %v336_v39 = vmul.f32 0.35355338, %v305_v38 }
 0x402   :  { %v338_v40 = vadd.f32 %v336_v39, %v1195_v62 }
 0x404   :  { %v340_v41 = vsel %vm150_vm8, %v338_v40, -inf }
 0x405   :  { %341 = vmax.xlane.f32.xlu1 %v340_v41 }
 0x416   :  { %v467_v61 = vpop.f32.mrf.mxu0 }
 0x417   :  { %v471_v6 = vmul.f32 0.35355338, %v467_v61 }
 0x419   :  { %v473_v14 = vadd.f32 %v471_v6, %v1195_v62 }
 0x41b   :  { %v477_v19 = vsel %vm150_vm8, %v473_v14, -inf }
 0x41e   :  { %414 = vrot.lane.b32.xlu1 %v1183_v53, %s1065_s22 }
 0x426   :  { %576 = vrot.lane.b32.xlu1 %v1186_v54, %s1064_s21 }
 0x478   :  { %v342_v42 = vpop.xlane.xlu1 %341 }
 0x479   :  { %v346_v43 = vsub.f32 %v338_v40, %v342_v42 }
 0x47b   :  { %v348_v44 = vmul.f32 1.442695, %v346_v43 }
 0x47d   :  { %998 = vpow2.f32 %v348_v44 }
 0x483   :  { %v999_v45 = vpop.eup %998 }
 0x484   :  { %v352_v46 = vsel %vm150_vm8, %v999_v45, 0.0 }
 0x485   :  { %353 = vadd.xlane.f32.xlu0 %v352_v46 }
 0x490   :  { %v415_v56 = vpop.permute.xlu1 %414 }
 0x498   :  { %v577_v59 = vpop.permute.xlu1 %576 }
 0x499   :  { %550 = vrot.lane.b32.xlu0 %v1183_v53, %s1066_s23 }
 0x4a1   :  { %578 = vrot.lane.b32.xlu0 %v1186_v54, %s1066_s23 }
 0x4cb   :  { %344 = vmax.xlane.f32.xlu0 %v343_v50 }
 0x4f8   :  { %v354_v51 = vpop.xlane.xlu0 %353 }
 0x4f9   :  { %1000 = vrcp.f32 %v354_v51 }
 0x4ff   :  { %v1001_v52 = vpop.eup %1000 }
 0x500   :  { %v360_v55 = vmul.f32 %v1001_v52, %v999_v45 }
 0x502   :  { %941 = vmatmul.msk.f32.vlgmr.msra.gmra.mxu2 %vm150_vm8, %v360_v55 }
 0x50a   :  { %944 = vmatmul.msk.f32.vlgmr.msrb.gmra.mxu2 %vm150_vm8, %v415_v56 }
 0x50b   :  { %v551_v57 = vpop.permute.xlu0 %550 }
 0x50c   :  { %949 = vmatpush.xpose.msk.msra.mxu2 %vm150_vm8, %v551_v57 }
 0x512   :  { %950 = vmatmul.msk.f32.vlgmr.msra.gmra.mxu2 %vm150_vm8, %v549_v33 }
 0x513   :  { %v579_v58 = vpop.permute.xlu0 %578 }
 0x514   :  { %951 = vmatpush.xpose.msk.msra.mxu0 %vm150_vm8, %v579_v58 }
 0x517   :  { %952 = vmatmul.msk.f32.vlgmr.msra.gmra.mxu0 %vm150_vm8, %v577_v59 }
 0x53e   :  { %v345_v1 = vpop.xlane.xlu0 %344 }
 0x53f   :  { %v347_v5 = vsub.f32 %v339_v49, %v345_v1 }
 0x541   :  { %v350_v9 = vmul.f32 1.442695, %v347_v5 }
 0x543   :  { %1002 = vpow2.f32 %v350_v9  ;;  %v715_v9 = vld [vmem:[%s1403_s4 + $0x8] sm:$0xff] }
 0x549   :  { %v1003_v20 = vpop.eup %1002 }
 0x54a   :  { %v355_v21 = vsel %vm150_vm8, %v1003_v20, 0.0 }
 0x585   :  { %v1247_v60 = vpop.f32.mrf.mxu2 }
 0x58d   :  { %v439_v63 = vpop.f32.mrf.mxu2 }
 0x58e   :  { %v470_v3 = vmul.f32 0.35355338, %v439_v63 }
 0x590   :  { %v472_v4 = vadd.f32 %v470_v3, %v1195_v62 }
 0x592   :  { %v474_v7 = vsel %vm150_vm8, %v472_v4, -inf }
 0x593   :  { %475 = vmax.xlane.f32.xlu2 %v474_v7  ;;  %v717_v7 = vld [vmem:[%s1403_s4 + $0x18] sm:$0xff] }
 0x594   :  { %v601_v8 = vpop.f32.mrf.mxu0  ;;  %740 = vmatpush.msrb.mxu2 %v717_v7 }
 0x595   :  { %v605_v11 = vmul.f32 0.35355338, %v601_v8  ;;  %v573_v12 = vpop.f32.mrf.mxu2  ;;  %v716_v8 = vld [vmem:[%s1403_s4 + $0x10] sm:$0xff] }
 0x596   :  { %v604_v13 = vmul.f32 0.35355338, %v573_v12  ;;  %741 = vmatpush.msrb.mxu2 %v716_v8 }
 0x597   :  { %v607_v15 = vadd.f32 %v605_v11, %v1195_v62  ;;  %v714_v11 = vld [vmem:[%s1403_s4] sm:$0xff]  ;;  %s917_s4 = sshll.u32 %s1411_s12, 4  ;;  %s918_s4 = int_to_ptr.hbm [resolvable:$true] %s917_s4 }
 0x598   :  { %v606_v16 = vadd.f32 %v604_v13, %v1195_v62  ;;  %742 = vmatpush.msrb.mxu2 %v715_v9 }
 0x599   :  { %v611_v17 = vsel %vm150_vm8, %v607_v15, -inf }
 0x59a   :  { %612 = vmax.xlane.f32.xlu0 %v611_v17  ;;  %v608_v18 = vsel %vm150_vm8, %v606_v16, -inf  ;;  %743 = vmatpush.msrb.mxu2 %v714_v11 }
 0x59b   :  { %609 = vmax.xlane.f32.xlu1 %v608_v18  ;;  %478 = vmax.xlane.f32.xlu2 %v477_v19 }
 0x5a3   :  { %356 = vadd.xlane.f32.xlu2 %v355_v21 }
 0x5ae   :  { %388 = vrot.lane.b32.xlu0 %v1186_v54, %s1062_s19 }
 0x5b6   :  { %522 = vrot.lane.b32.xlu0 %v1186_v54, %s1067_s24 }
 0x606   :  { %v476_v62 = vpop.xlane.xlu2 %475 }
 0x607   :  { %v480_v22 = vsub.f32 %v472_v4, %v476_v62 }
 0x609   :  { %v482_v23 = vmul.f32 1.442695, %v480_v22 }
 0x60b   :  { %1004 = vpow2.f32 %v482_v23 }
 0x60d   :  { %v613_v33 = vpop.xlane.xlu0 %612 }
 0x60e   :  { %v479_v24 = vpop.xlane.xlu2 %478  ;;  %v610_v25 = vpop.xlane.xlu1 %609  ;;  %v615_v44 = vsub.f32 %v607_v15, %v613_v33 }
 0x60f   :  { %v481_v26 = vsub.f32 %v473_v14, %v479_v24  ;;  %v614_v27 = vsub.f32 %v606_v16, %v610_v25 }
 0x610   :  { %v618_v45 = vmul.f32 1.442695, %v615_v44 }
 0x611   :  { %v1005_v28 = vpop.eup %1004  ;;  %v484_v29 = vmul.f32 1.442695, %v481_v26  ;;  %v616_v30 = vmul.f32 1.442695, %v614_v27 }
 0x612   :  { %v486_v31 = vsel %vm150_vm8, %v1005_v28, 0.0 }
 0x613   :  { %1006 = vpow2.f32 %v484_v29  ;;  %487 = vadd.xlane.f32.xlu1 %v486_v31 }
 0x614   :  { %1008 = vpow2.f32 %v616_v30 }
 0x616   :  { %v357_v32 = vpop.xlane.xlu2 %356 }
 0x617   :  { %1010 = vrcp.f32 %v357_v32 }
 0x618   :  { %1012 = vpow2.f32 %v618_v45 }
 0x619   :  { %v1007_v34 = vpop.eup %1006 }
 0x61a   :  { %v1009_v35 = vpop.eup %1008  ;;  %v489_v38 = vsel %vm150_vm8, %v1007_v34, 0.0 }
 0x61b   :  { %490 = vadd.xlane.f32.xlu2 %v489_v38  ;;  %v620_v39 = vsel %vm150_vm8, %v1009_v35, 0.0 }
 0x61c   :  { %621 = vadd.xlane.f32.xlu0 %v620_v39 }
 0x61d   :  { %v1011_v40 = vpop.eup %1010 }
 0x61e   :  { %v361_v41 = vmul.f32 %v1011_v40, %v1003_v20  ;;  %v1013_v46 = vpop.eup %1012  ;;  %v812_v40 = vld [vmem:[%s1407_s8 + $0x18] sm:$0xff] }
 0x61f   :  { %v623_v47 = vsel %vm150_vm8, %v1013_v46, 0.0  ;;  %835 = vmatpush.msrb.mxu0 %v812_v40 }
 0x620   :  { %v389_v42 = vpop.permute.xlu0 %388 }
 0x621   :  { %409 = vmatpush.msra.mxu1 %v389_v42  ;;  %v810_v42 = vld [vmem:[%s1407_s8 + $0x8] sm:$0xff] }
 0x622   :  { %942 = vmatmul.msk.f32.vlgmr.msra.gmra.mxu1 %vm150_vm8, %v361_v41  ;;  %v811_v41 = vld [vmem:[%s1407_s8 + $0x10] sm:$0xff] }
 0x623   :  { %836 = vmatpush.msrb.mxu0 %v811_v41 }
 0x625   :  { %837 = vmatpush.msrb.mxu0 %v810_v42 }
 0x628   :  { %v523_v43 = vpop.permute.xlu0 %522 }
 0x629   :  { %543 = vmatpush.msrb.mxu1 %v523_v43  ;;  %v809_v43 = vld [vmem:[%s1407_s8] sm:$0xff] }
 0x62a   :  { %838 = vmatpush.msrb.mxu0 %v809_v43 }
 0x62c   :  { %496 = vrot.lane.b32.xlu1 %v1183_v53, %s1067_s24 }
 0x630   :  { %656 = vrot.lane.b32.xlu0 %v1186_v54, %s1068_s0 }
 0x633   :  { %630 = vrot.lane.b32.xlu2 %v1183_v53, %s1068_s0 }
 0x63b   :  { %684 = vrot.lane.b32.xlu2 %v1247_v60, %s1069_s25 }
 0x656   :  { %624 = vadd.xlane.f32.xlu1 %v623_v47 }
 0x686   :  { %v488_v49 = vpop.xlane.xlu1 %487 }
 0x68e   :  { %v491_v48 = vpop.xlane.xlu2 %490 }
 0x68f   :  { %1014 = vrcp.f32 %v491_v48  ;;  %v622_v53 = vpop.xlane.xlu0 %621 }
 0x690   :  { %1016 = vrcp.f32 %v488_v49 }
 0x691   :  { %1018 = vrcp.f32 %v622_v53 }
 0x695   :  { %v1015_v50 = vpop.eup %1014 }
 0x696   :  { %v495_v51 = vmul.f32 %v1015_v50, %v1007_v34  ;;  %v1017_v54 = vpop.eup %1016  ;;  %v631_v56 = vpop.permute.xlu2 %630 }
 0x697   :  { %v494_v55 = vmul.f32 %v1017_v54, %v1005_v28  ;;  %v1019_v58 = vpop.eup %1018  ;;  %v980_v54 = vld [vmem:[%s1405_s6] ss:$0 sm:$0xff] }
 0x698   :  { %948 = vmatmul.msk.f32.vlgmr.msrb.gmra.mxu1 %vm150_vm8, %v495_v51  ;;  %v628_v59 = vmul.f32 %v1019_v58, %v1009_v35 }
 0x69e   :  { %v497_v52 = vpop.permute.xlu1 %496  ;;  %v685_v12 = vpop.permute.xlu2 %684 }
 0x69f   :  { %517 = vmatpush.msra.mxu3 %v497_v52  ;;  %v411_v3 = vpop.f32.mrf.mxu1  ;;  %v706_v13 = vsel %vm150_vm8, %v1226_v36, %v685_v12  ;;  %v979_v36 = vld [vmem:[%s1404_s5] ss:$0 sm:$0xff] }
 0x6a0   :  { %947 = vmatmul.msk.f32.vlgmr.msra.gmra.mxu3 %vm150_vm8, %v494_v55 }
 0x6a1   :  { %651 = vmatpush.msrb.mxu3 %v631_v56  ;;  %v981_v56 = vld [vmem:[%s1406_s7] ss:$0 sm:$0xff] }
 0x6a2   :  { %v657_v57 = vpop.permute.xlu0 %656 }
 0x6a3   :  { %677 = vmatpush.msra.mxu1 %v657_v57 }
 0x6a8   :  { %953 = vmatmul.msk.f32.vlgmr.msrb.gmra.mxu3 %vm150_vm8, %v628_v59  ;;  %v879_v59 = vld [vmem:[%s1409_s10 + $0x78] sm:$0xff] }
 0x6a9   :  { %884 = vmatpush.msra.mxu3 %v879_v59 }
 0x6c9   :  { %v625_v60 = vpop.xlane.xlu1 %624 }
 0x6ca   :  { %1020 = vrcp.f32 %v625_v60  ;;  %v878_v60 = vld [vmem:[%s1409_s10 + $0x70] sm:$0xff] }
 0x6cb   :  { %885 = vmatpush.msra.mxu3 %v878_v60 }
 0x6d0   :  { %v1021_v61 = vpop.eup %1020 }
 0x6d1   :  { %v629_v63 = vmul.f32 %v1021_v61, %v1013_v46  ;;  %v877_v61 = vld [vmem:[%s1409_s10 + $0x68] sm:$0xff] }
 0x6d2   :  { %886 = vmatpush.msra.mxu3 %v877_v61 }
 0x6d3   :  { %954 = vmatmul.msk.f32.vlgmr.msra.gmra.mxu1 %vm150_vm8, %v629_v63 }
 0x715   :  { %v545_v5 = vpop.f32.mrf.mxu1 }
 0x723   :  { %v519_v1 = vpop.f32.mrf.mxu3 }
 0x724   :  { %692 = vrot.lane.b32.xlu0 %v519_v1, %s1070_s26 }
 0x72b   :  { %v653_v4 = vpop.f32.mrf.mxu3 }
 0x72c   :  { %686 = vrot.lane.b32.xlu0 %v411_v3, %s1069_s25  ;;  %700 = vrot.lane.b32.xlu2 %v653_v4, %s1071_s27  ;;  %v876_v3 = vld [vmem:[%s1409_s10 + $0x60] sm:$0xff] }
 0x72d   :  { %887 = vmatpush.msra.mxu3 %v876_v3 }
 0x734   :  { %694 = vrot.lane.b32.xlu2 %v545_v5, %s1070_s26 }
 0x750   :  { %v679_v6 = vpop.f32.mrf.mxu1 }
 0x751   :  { %702 = vrot.lane.b32.xlu0 %v679_v6, %s1071_s27 }
 0x786   :  { %v701_v15 = vpop.permute.xlu2 %700 }
 0x78e   :  { %v695_v20 = vpop.permute.xlu2 %694 }
 0x796   :  { %v693_v14 = vpop.permute.xlu0 %692 }
 0x797   :  { %v709_v16 = vsel %vm708_vm10, %v706_v13, %v693_v14 }
 0x798   :  { %v712_v17 = vsel %vm711_vm11, %v709_v16, %v701_v15  ;;  %v875_v15 = vld [vmem:[%s1409_s10 + $0x58] sm:$0xff]  ;;  %v874_v16 = vld [vmem:[%s1409_s10 + $0x50] sm:$0xff] }
 0x799   :  { %955 = vmatmul.msk.f32.vlgmr.msrb.gmra.mxu2 %vm46_vm0, %v712_v17  ;;  %888 = vmatpush.msra.mxu3 %v875_v15  ;;  %v873_v17 = vld [vmem:[%s1409_s10 + $0x48] sm:$0xff] }
 0x79b   :  { %889 = vmatpush.msra.mxu3 %v874_v16 }
 0x79d   :  { %890 = vmatpush.msra.mxu3 %v873_v17 }
 0x79e   :  { %v687_v18 = vpop.permute.xlu0 %686 }
 0x79f   :  { %v707_v19 = vsel %vm150_vm8, %v1228_v37, %v687_v18  ;;  %v872_v18 = vld [vmem:[%s1409_s10 + $0x40] sm:$0xff] }
 0x7a0   :  { %v710_v62 = vsel %vm708_vm10, %v707_v19, %v695_v20  ;;  %v871_v19 = vld [vmem:[%s1409_s10 + $0x38] sm:$0xff]  ;;  %891 = vmatpush.msra.mxu3 %v872_v18  ;;  %v870_v20 = vld [vmem:[%s1409_s10 + $0x30] sm:$0xff] }
 0x7a2   :  { %892 = vmatpush.msra.mxu3 %v871_v19 }
 0x7a4   :  { %893 = vmatpush.msra.mxu3 %v870_v20 }
 0x7c3   :  { %v703_v21 = vpop.permute.xlu0 %702 }
 0x7c4   :  { %v713_v22 = vsel %vm711_vm11, %v710_v62, %v703_v21  ;;  %v869_v21 = vld [vmem:[%s1409_s10 + $0x28] sm:$0xff]  ;;  %v868_v62 = vld [vmem:[%s1409_s10 + $0x20] sm:$0xff] }
 0x7c5   :  { %956 = vmatmul.msk.f32.gmra.mxu2 %vm46_vm0, %v713_v22  ;;  %894 = vmatpush.msra.mxu3 %v869_v21  ;;  %v867_v22 = vld [vmem:[%s1409_s10 + $0x18] sm:$0xff] }
 0x7c7   :  { %895 = vmatpush.msra.mxu3 %v868_v62 }
 0x7c9   :  { %896 = vmatpush.msra.mxu3 %v867_v22 }
 0x81c   :  { %v745_v23 = vpop.f32.mrf.mxu2 }
 0x81d   :  { %v746_v24 = vadd.f32 %v979_v36, %v745_v23  ;;  %v865_v23 = vld [vmem:[%s1409_s10 + $0x8] sm:$0xff] }
 0x81f   :  { %v1300_v25 = vadd.f32 %v746_v24, %v1142_v0  ;;  %v864_v24 = vld [vmem:[%s1409_s10] sm:$0xff] }
 0x821   :  { %v755_v26 = vsel %vm46_vm0, %v1300_v25, 0.0 }
 0x822   :  { %756 = vadd.xlane.f32.xlu2 %v755_v26  ;;  %v982_v26 = vld [vmem:[%s1408_s9] ss:$0 sm:$0xff] }
 0x848   :  { %v748_v37 = vpop.f32.mrf.mxu2 }
 0x849   :  { %v749_v27 = vadd.f32 %v979_v36, %v748_v37  ;;  %v866_v36 = vld [vmem:[%s1409_s10 + $0x10] sm:$0xff] }
 0x84a   :  { %897 = vmatpush.msra.mxu3 %v866_v36 }
 0x84b   :  { %v1305_v28 = vadd.f32 %v749_v27, %v1149_v2 }
 0x84c   :  { %898 = vmatpush.msra.mxu3 %v865_v23 }
 0x84d   :  { %v758_v29 = vsel %vm46_vm0, %v1305_v28, 0.0 }
 0x84e   :  { %759 = vadd.xlane.f32.xlu0 %v758_v29  ;;  %899 = vmatpush.msra.mxu3 %v864_v24 }
 0x895   :  { %v757_v30 = vpop.xlane.xlu2 %756 }
 0x896   :  { %v761_v31 = vmul.f32 %v757_v30, %v1153_v10 }
 0x898   :  { %v763_v32 = vsub.f32 %v1300_v25, %v761_v31 }
 0x89a   :  { %v765_v0 = vmul.f32 %v763_v32, %v763_v32 }
 0x89c   :  { %v767_v33 = vsel %vm46_vm0, %v765_v0, 0.0 }
 0x89d   :  { %768 = vadd.xlane.f32.xlu1 %v767_v33 }
 0x8c1   :  { %v760_v34 = vpop.xlane.xlu0 %759 }
 0x8c2   :  { %v762_v35 = vmul.f32 %v760_v34, %v1153_v10 }
 0x8c4   :  { %v764_v38 = vsub.f32 %v1305_v28, %v762_v35 }
 0x8c6   :  { %v766_v2 = vmul.f32 %v764_v38, %v764_v38 }
 0x8c8   :  { %v770_v39 = vsel %vm46_vm0, %v766_v2, 0.0 }
 0x8c9   :  { %771 = vadd.xlane.f32.xlu1 %v770_v39 }
 0x910   :  { %v769_v44 = vpop.xlane.xlu1 %768 }
 0x911   :  { %v773_v45 = vmul.f32 %v769_v44, %v1153_v10 }
 0x913   :  { %v775_v46 = vadd.f32 1e-05, %v773_v45 }
 0x915   :  { %1022 = vrsqrt.f32 %v775_v46  ;;  %vm783_vm13 = vweird.f32 %v775_v46 }
 0x91b   :  { %v1023_v47 = vpop.eup %1022 }
 0x91c   :  { %v778_v48 = vmul.f32 %v1023_v47, %v775_v46  ;;  %vm784_vm12 = vweird.f32 %v1023_v47 }
 0x91d   :  { %vm785_vm14 = vmor %vm783_vm13, %vm784_vm12 }
 0x91e   :  { %v779_v49 = vmul.f32 %v1023_v47, %v778_v48 }
 0x920   :  { %v780_v50 = vmul.f32 0.5, %v779_v49  ;;  %v983_v49 = vld [vmem:[%s1410_s11] ss:$0 sm:$0xff]  ;;  %s1073_s11 = smov 128  }
 0x922   :  { %v781_v51 = vsub.f32 1.5, %v780_v50 }
 0x924   :  { %v782_v53 = vmul.f32 %v1023_v47, %v781_v51 }
 0x926   :  { %v786_v52 = vsel %vm785_vm14, %v1023_v47, %v782_v53 }
 0x927   :  { %v797_v55 = vmul.f32 %v786_v52, %v763_v32 }
 0x929   :  { %v802_v57 = vmul.f32 %v980_v54, %v797_v55 }
 0x92b   :  { %v807_v58 = vadd.f32 %v981_v56, %v802_v57 }
 0x92d   :  { %957 = vmatmul.msk.f32.vlgmr.msrb.gmra.mxu0 %vm46_vm0, %v807_v58 }
 0x93c   :  { %v772_v63 = vpop.xlane.xlu1 %771 }
 0x93d   :  { %v774_v1 = vmul.f32 %v772_v63, %v1153_v10 }
 0x93f   :  { %v776_v4 = vadd.f32 1e-05, %v774_v1 }
 0x941   :  { %1024 = vrsqrt.f32 %v776_v4  ;;  %vm793_vm1 = vweird.f32 %v776_v4 }
 0x947   :  { %v1025_v5 = vpop.eup %1024 }
 0x948   :  { %v788_v6 = vmul.f32 %v1025_v5, %v776_v4  ;;  %vm794_vm15 = vweird.f32 %v1025_v5 }
 0x949   :  { %vm795_vm2 = vmor %vm793_vm1, %vm794_vm15 }
 0x94a   :  { %v789_v7 = vmul.f32 %v1025_v5, %v788_v6 }
 0x94c   :  { %v790_v8 = vmul.f32 0.5, %v789_v7 }
 0x94e   :  { %v791_v9 = vsub.f32 1.5, %v790_v8 }
 0x950   :  { %v792_v11 = vmul.f32 %v1025_v5, %v791_v9 }
 0x952   :  { %v796_v12 = vsel %vm795_vm2, %v1025_v5, %v792_v11 }
 0x953   :  { %v798_v13 = vmul.f32 %v796_v12, %v764_v38 }
 0x955   :  { %v803_v10 = vmul.f32 %v980_v54, %v798_v13 }
 0x957   :  { %v808_v14 = vadd.f32 %v981_v56, %v803_v10 }
 0x959   :  { %958 = vmatmul.msk.f32.gmra.mxu0 %vm46_vm0, %v808_v14 }
 0x9aa   :  { %v840_v37 = vpop.f32.mrf.mxu0 }
 0x9ab   :  { %v841_v27 = vadd.f32 %v982_v26, %v840_v37 }
 0x9ad   :  { %v848_v29 = vmul.f32 0.044715, %v841_v27  ;;  %v846_v34 = vmul.f32 0.5, %v841_v27 }
 0x9af   :  { %v850_v30 = vmul.f32 %v848_v29, %v841_v27 }
 0x9b1   :  { %v852_v31 = vmul.f32 %v850_v30, %v841_v27 }
 0x9b3   :  { %v854_v32 = vadd.f32 %v852_v31, %v841_v27 }
 0x9b5   :  { %v856_v0 = vmul.f32 0.7978846, %v854_v32 }
 0x9b7   :  { %1026 = vtanh.f32 %v856_v0 }
 0x9bd   :  { %v1027_v33 = vpop.eup %1026 }
 0x9be   :  { %v860_v35 = vadd.f32 1.0, %v1027_v33 }
 0x9c0   :  { %v862_v38 = vmul.f32 %v860_v35, %v846_v34 }
 0x9c2   :  { %900 = vmatmul.f32.vlgmr.msra.gmra.mxu3 %v862_v38 }
 0x9d6   :  { %v843_v2 = vpop.f32.mrf.mxu0 }
 0x9d7   :  { %v844_v39 = vadd.f32 %v982_v26, %v843_v2 }
 0x9d9   :  { %v849_v40 = vmul.f32 0.044715, %v844_v39  ;;  %v847_v46 = vmul.f32 0.5, %v844_v39 }
 0x9db   :  { %v851_v41 = vmul.f32 %v849_v40, %v844_v39 }
 0x9dd   :  { %v853_v42 = vmul.f32 %v851_v41, %v844_v39 }
 0x9df   :  { %v855_v43 = vadd.f32 %v853_v42, %v844_v39 }
 0x9e1   :  { %v857_v44 = vmul.f32 0.7978846, %v855_v43 }
 0x9e3   :  { %1028 = vtanh.f32 %v857_v44 }
 0x9e9   :  { %v1029_v45 = vpop.eup %1028 }
 0x9ea   :  { %v861_v47 = vadd.f32 1.0, %v1029_v45 }
 0x9ec   :  { %v863_v48 = vmul.f32 %v861_v47, %v847_v46 }
 0x9ee   :  { %903 = vmatmul.f32.gmra.mxu3 %v863_v48 }
 0xa45   :  { %v901_v50 = vpop.f32.mrf.mxu3 }
 0xa46   :  { %v902_v51 = vadd.f32 %v983_v49, %v901_v50 }
 0xa48   :  { %v907_v53 = vadd.f32 %v902_v51, %v1300_v25 }
 0xa4a   :  { %909 = vst.msk [vmem:[#allocation2] sm:$0xff] %vm46_vm0, %v907_v53 }
 0xa71   :  { %v904_v54 = vpop.f32.mrf.mxu3 }
 0xa72   :  { %v905_v52 = vadd.f32 %v983_v49, %v904_v54 }
 0xa74   :  { %v908_v55 = vadd.f32 %v905_v52, %v1305_v28 }
 0xa76   :  { %910 = vst.msk [vmem:[#allocation2 + $0x8] sm:$0xff] %vm46_vm0, %v908_v55 }
 0xa77   :  { %923 = dma.vmem_to_hbm [thread:$0]  %s916_s14, 256, %s918_s4, [#allocation3], %s1073_s11, %s1073_s11, %s1069_s25  }
 0xa78   :  { %1054 = dma.done.wait [#allocation3], 256  }
 0xa79   :  { %1055 = vsyncadd [#allocation3], 4294967040 }
 0xa7a   :  { %928 = vsyncpa [#allocation3], 1 }

</bundles_post_ra>
